<compile_context>
chip_gen: v5e
topology: v5e:2x2
jax: 0.10.0
libtpu: 0.0.40
codegen_flags: <defaults>
</compile_context>

<pallas_src>
import functools

import jax
import jax.numpy as jnp
from jax.experimental import pallas as pl
from jax.experimental.pallas import tpu as pltpu


def _round_up(n, m):
    return (n + m - 1) // m * m


# ----------------------------- kernel -------------------------------------- #

def _se_kernel(x_ref, wp_ref, o_ref, *, C, Cr, r_b1, r_w2, r_b2):
    # x_ref/o_ref block: (TB, C, HW) — HW on the lane axis (lane-dense).
    # wp_ref: packed weights, (R, max(C, Cr)) f32, 8-row-aligned segments:
    #   rows [0, C)            cols [0, Cr) : conv1 weight transposed (C, Cr)
    #   row  r_b1              cols [0, Cr) : conv1 bias
    #   rows [r_w2, r_w2 + Cr) cols [0, C)  : conv2 weight transposed (Cr, C)
    #   row  r_b2              cols [0, C)  : conv2 bias
    x = x_ref[...].astype(jnp.float32)                      # (TB, C, HW)

    # Squeeze: AdaptiveAvgPool2d(1) == mean over the spatial (lane) axis.
    avg = jnp.mean(x, axis=2)                               # (TB, C)

    # Static slices of the packed weight blob.
    w1t = wp_ref[0:C, 0:Cr]                                 # (C, Cr)
    b1 = wp_ref[r_b1:r_b1 + 1, 0:Cr]                        # (1, Cr)
    w2t = wp_ref[r_w2:r_w2 + Cr, 0:C]                       # (Cr, C)
    b2 = wp_ref[r_b2:r_b2 + 1, 0:C]                         # (1, C)

    # Excitation: the two 1x1 convs are dense layers on the pooled vectors,
    # batched once per block over all TB elements.
    h = jnp.dot(avg, w1t, preferred_element_type=jnp.float32) + b1   # (TB, Cr)
    h = jnp.maximum(h, 0.0)
    s = jnp.dot(h, w2t, preferred_element_type=jnp.float32) + b2     # (TB, C)
    scale = jax.nn.sigmoid(s)                                        # (TB, C)

    # Channel-wise rescale, broadcast over the HW lanes.
    o_ref[...] = (x * scale[:, :, None]).astype(o_ref.dtype)


# ----------------------------- wrapper ------------------------------------- #

def _pick_tb(B, per_elem_bytes, target_block_bytes=4 << 20, min_grid=2):
    """Largest batch-tile giving ~target-sized blocks while keeping >= min_grid
    grid steps (so v7x's 2 TensorCores both get work)."""
    tb = max(1, target_block_bytes // max(per_elem_bytes, 1))
    if B >= min_grid:
        tb = min(tb, B // min_grid)
    return int(max(1, min(tb, B)))


def se_block_forward(x, params):
    """x: (B, C, H, W).  params use PyTorch Conv2d layouts:
       w1 (Cr, C, 1, 1), b1 (Cr,), w2 (C, Cr, 1, 1), b2 (C,)."""
    B, C, H, W = x.shape
    HW = H * W
    itemsize = jnp.dtype(x.dtype).itemsize

    # ---- pack the four tiny weight/bias operands into one VMEM operand ----
    Cr = params["w1"].shape[0]
    r_b1 = _round_up(C, 8)
    r_w2 = r_b1 + 8
    r_b2 = r_w2 + _round_up(Cr, 8)
    R = _round_up(r_b2 + 1, 8)
    Wc = max(C, Cr)
    wpack = jnp.zeros((R, Wc), jnp.float32)
    wpack = wpack.at[0:C, 0:Cr].set(
        params["w1"].reshape(Cr, C).T.astype(jnp.float32))
    wpack = wpack.at[r_b1, 0:Cr].set(params["b1"].astype(jnp.float32))
    wpack = wpack.at[r_w2:r_w2 + Cr, 0:C].set(
        params["w2"].reshape(C, Cr).T.astype(jnp.float32))
    wpack = wpack.at[r_b2, 0:C].set(params["b2"].astype(jnp.float32))

    # ---- batch tiling: several batch elements per grid step ---------------
    per_elem_bytes = C * HW * itemsize
    TB = _pick_tb(B, per_elem_bytes)
    grid_b = pl.cdiv(B, TB)
    B_pad = grid_b * TB

    x_flat = x.reshape(B, C, HW)
    if B_pad != B:
        # Zero padding is numerically safe (scaled zeros), sliced off below.
        x_flat = jnp.pad(x_flat, ((0, B_pad - B), (0, 0), (0, 0)))

    # ---- VMEM budget (double-buffered in + out blocks, plus weights) ------
    block_bytes = TB * per_elem_bytes
    vmem_limit = int(min(48 << 20,
                         max(8 << 20,
                             2 * 2 * block_bytes + 2 * wpack.nbytes + (1 << 20))))

    cost = pl.CostEstimate(
        flops=int(B_pad * (3 * C * HW + 4 * C * Cr)),
        transcendentals=int(B_pad * C),            # sigmoid
        bytes_accessed=int(2 * B_pad * C * HW * itemsize + wpack.nbytes),
    )

    kernel = functools.partial(_se_kernel, C=C, Cr=Cr,
                               r_b1=r_b1, r_w2=r_w2, r_b2=r_b2)

    out = pl.pallas_call(
        kernel,
        out_shape=jax.ShapeDtypeStruct((B_pad, C, HW), x.dtype),
        grid_spec=pltpu.PrefetchScalarGridSpec(
            num_scalar_prefetch=0,
            grid=(grid_b,),
            in_specs=[
                pl.BlockSpec((TB, C, HW), lambda b: (b, 0, 0)),   # x (lane-dense)
                pl.BlockSpec((R, Wc), lambda b: (0, 0)),          # packed weights
            ],
            out_specs=pl.BlockSpec((TB, C, HW), lambda b: (b, 0, 0)),
        ),
        compiler_params=pltpu.CompilerParams(
            dimension_semantics=("parallel",),   # v7x: batch blocks across TCs
            vmem_limit_bytes=vmem_limit,
        ),
        cost_estimate=cost,
    )(x_flat, wpack)

    return out[:B].reshape(B, C, H, W)


# ----------------------------- reference ----------------------------------- #

def se_block_reference(x, params):
    B, C, H, W = x.shape
    Cr = params["w1"].shape[0]
    w = jnp.mean(x, axis=(2, 3))                                   # (B, C)
    h = jnp.maximum(w @ params["w1"].reshape(Cr, C).T
                    + params["b1"][None, :], 0.0)                  # (B, Cr)
    s = jax.nn.sigmoid(h @ params["w2"].reshape(C, Cr).T
                       + params["b2"][None, :])                    # (B, C)
    return x * s[:, :, None, None]


# ------------------------------- main --------------------------------------- #

if __name__ == "__main__":
    C, H, W = 32, 16, 16
    reduction = 8
    Cr = C // reduction                 # = 4

    key = jax.random.PRNGKey(0)
    kx, k1, k2, k3, k4, kx2 = jax.random.split(key, 6)

    params = {
        # PyTorch Conv2d layouts: weight (out, in, 1, 1), bias (out,)
        "w1": jax.random.normal(k1, (Cr, C, 1, 1), jnp.float32) * 0.1,
        "b1": jax.random.normal(k2, (Cr,), jnp.float32) * 0.1,
        "w2": jax.random.normal(k3, (C, Cr, 1, 1), jnp.float32) * 0.1,
        "b2": jax.random.normal(k4, (C,), jnp.float32) * 0.1,
    }

    # Small canonical case (B=2 -> TB=1, grid=2).
    x = jax.random.normal(kx, (2, C, H, W), jnp.float32)
    out = jax.block_until_ready(se_block_forward(x, params))
    ref = jax.block_until_ready(se_block_reference(x, params))
    assert out.shape == x.shape
    assert jnp.allclose(out, ref, rtol=1e-4, atol=1e-4), (
        f"max abs diff {jnp.max(jnp.abs(out - ref))}")

    # Larger, non-divisible batch: exercises TB > 1 blocking + zero padding.
    x2 = jax.random.normal(kx2, (19, C, H, W), jnp.float32)
    out2 = jax.block_until_ready(se_block_forward(x2, params))
    ref2 = jax.block_until_ready(se_block_reference(x2, params))
    assert out2.shape == x2.shape
    assert jnp.allclose(out2, ref2, rtol=1e-4, atol=1e-4), (
        f"max abs diff {jnp.max(jnp.abs(out2 - ref2))}")

    print("KERNEL_OK")
</pallas_src>

<mosaic_0001>
module attributes {stable_mosaic.version = 11 : i64} {
  func.func @_se_kernel(%arg0: i32, %arg1: memref<1x32x256xf32, #tpu.memory_space<vmem>>, %arg2: memref<56x32xf32, #tpu.memory_space<vmem>>, %arg3: memref<1x32x256xf32, #tpu.memory_space<vmem>>) attributes {dimension_semantics = [#tpu.dimension_semantics<parallel>], iteration_bounds = array<i64: 2>, scalar_prefetch = 0 : i64, scratch_operands = 0 : i64, tpu.core_type = #tpu.core_type<tc>, window_params = [{transform_indices = @transform_0, window_bounds = array<i64: 1, 32, 256>}, {pipeline_mode = #tpu.pipeline_mode<synchronous>, transform_indices = @transform_1, window_bounds = array<i64: 56, 32>}, {transform_indices = @transform_2, window_bounds = array<i64: 1, 32, 256>}]} {
    %c0 = arith.constant 0 : index
    %c0_0 = arith.constant 0 : index
    %c0_1 = arith.constant 0 : index
    %0 = vector.load %arg1[%c0, %c0_0, %c0_1] : memref<1x32x256xf32, #tpu.memory_space<vmem>>, vector<1x32x256xf32>
    %cst = arith.constant dense<0.000000e+00> : vector<1x32xf32>
    %1 = vector.multi_reduction <add>, %0, %cst [2] : vector<1x32x256xf32> to vector<1x32xf32>
    %cst_2 = arith.constant 2.560000e+02 : f32
    %2 = vector.broadcast %cst_2 : f32 to vector<1x32xf32>
    %3 = arith.divf %1, %2 : vector<1x32xf32>
    %c0_3 = arith.constant 0 : index
    %c0_4 = arith.constant 0 : index
    %4 = vector.load %arg2[%c0_3, %c0_4] : memref<56x32xf32, #tpu.memory_space<vmem>>, vector<32x4xf32>
    %c32 = arith.constant 32 : index
    %c0_5 = arith.constant 0 : index
    %5 = vector.load %arg2[%c32, %c0_5] : memref<56x32xf32, #tpu.memory_space<vmem>>, vector<1x4xf32>
    %c40 = arith.constant 40 : index
    %c0_6 = arith.constant 0 : index
    %6 = vector.load %arg2[%c40, %c0_6] : memref<56x32xf32, #tpu.memory_space<vmem>>, vector<4x32xf32>
    %c48 = arith.constant 48 : index
    %c0_7 = arith.constant 0 : index
    %7 = vector.load %arg2[%c48, %c0_7] : memref<56x32xf32, #tpu.memory_space<vmem>>, vector<1x32xf32>
    %cst_8 = arith.constant dense<0.000000e+00> : vector<1x4xf32>
    %8 = tpu.matmul %3, %4, %cst_8 {dimension_numbers = #tpu.dot_dimension_numbers<[1], [0], [0], [1], [0, 0, 1, 1], [], []>} : vector<1x32xf32>, vector<32x4xf32>, vector<1x4xf32> -> vector<1x4xf32>
    %9 = arith.addf %8, %5 : vector<1x4xf32>
    %cst_9 = arith.constant 0.000000e+00 : f32
    %10 = vector.broadcast %cst_9 : f32 to vector<1x4xf32>
    %11 = arith.maximumf %9, %10 : vector<1x4xf32>
    %cst_10 = arith.constant dense<0.000000e+00> : vector<1x32xf32>
    %12 = tpu.matmul %11, %6, %cst_10 {dimension_numbers = #tpu.dot_dimension_numbers<[1], [0], [0], [1], [0, 0, 1, 1], [], []>} : vector<1x4xf32>, vector<4x32xf32>, vector<1x32xf32> -> vector<1x32xf32>
    %13 = arith.addf %12, %7 : vector<1x32xf32>
    %14 = arith.negf %13 : vector<1x32xf32>
    %15 = math.exp %14 : vector<1x32xf32>
    %cst_11 = arith.constant 1.000000e+00 : f32
    %16 = vector.broadcast %cst_11 : f32 to vector<1x32xf32>
    %17 = arith.addf %16, %15 : vector<1x32xf32>
    %18 = arith.divf %16, %17 : vector<1x32xf32>
    %19 = vector.shape_cast %18 : vector<1x32xf32> to vector<1x32x1xf32>
    %20 = vector.broadcast %19 : vector<1x32x1xf32> to vector<1x32x256xf32>
    %21 = arith.mulf %0, %20 : vector<1x32x256xf32>
    %c0_12 = arith.constant 0 : index
    %c0_13 = arith.constant 0 : index
    %c0_14 = arith.constant 0 : index
    %22 = vector.load %arg3[%c0_12, %c0_13, %c0_14] : memref<1x32x256xf32, #tpu.memory_space<vmem>>, vector<1x32x256xf32>
    tpu.vector_store %arg3[%c0_12, %c0_13, %c0_14], %21 {strides = array<i32>} : memref<1x32x256xf32, #tpu.memory_space<vmem>>, vector<1x32x256xf32>,
    return
  }
  func.func @transform_0(%arg0: i32) -> (i32, i32, i32) {
    %c0_i32 = arith.constant 0 : i32
    %c0_i32_0 = arith.constant 0 : i32
    %c0_i32_1 = arith.constant 0 : i32
    return %arg0, %c0_i32, %c0_i32_0 : i32, i32, i32
  }
  func.func @transform_1(%arg0: i32) -> (i32, i32) {
    %c0_i32 = arith.constant 0 : i32
    %c0_i32_0 = arith.constant 0 : i32
    %c0_i32_1 = arith.constant 0 : i32
    return %c0_i32, %c0_i32_0 : i32, i32
  }
  func.func @transform_2(%arg0: i32) -> (i32, i32, i32) {
    %c0_i32 = arith.constant 0 : i32
    %c0_i32_0 = arith.constant 0 : i32
    %c0_i32_1 = arith.constant 0 : i32
    return %arg0, %c0_i32, %c0_i32_0 : i32, i32, i32
  }
}

</mosaic_0001>

<bundles_post_ra>
// kernel: tpu_custom_call.1
= control target key start
LH: loop header
LB: loop body
LE: loop exit
PB: predicated region body
PF: predicated region fallthrough
CT: control target
= control target key end

     0   :  { %7 = vsyncpa [#allocation3], 0  ;;  %s806_s0 = inlined_call_operand.hbm [shape: f32[2,32,256], index: 0, kind: input, shape index: {}]   ;;  %s807_s1 = inlined_call_operand.vmem [shape: f32[56,32], index: 1, kind: input, shape index: {}]   ;;  %s808_s2 = inlined_call_operand.hbm [shape: f32[2,32,256], index: 2, kind: output, shape index: {}]  }
   0x1   :  { %9 = vsyncpa [#allocation3 + $0x1], 0 }
   0x2   :  { %10 = vsyncpa [#allocation4], 0 }
   0x3   :  { %12 = vsyncpa [#allocation4 + $0x1], 0  ;;  %s622_s9 = smov 0   ;;  %s624_s10 = smov 0  }
   0x4   :  { %s626_s11 = smov 0   ;;  %s628_s12 = smov 0  }
   0x5 LB: > { %s643_s13 = sadd.s32 4294967295, %s600_s12   ;;  %s422_s14 = sadd.s32 4294967294, %s600_s12   ;;  %s600_s12 = sphi %s628_s12, %s818_s12   ;;  %s596_s11 = sphi %s626_s11, %s817_s11   ;;  %s592_s10 = sphi %s624_s10, %s816_s10   ;;  %s588_s9 = sphi %s622_s9, %s815_s9  }
   0x6   : > { %s647_s15 = sadd.s32 1, %s600_s12   ;;  %s25_s16 = sadd.s32 1, %s596_s11 }
   0x7   : > { %s22_s17 = ssub.s32 %s600_s12, %s647_s15  ;;  %p32_p0 = scmp.ne.s32.totalorder %s596_s11, %s592_s10 }
   0x8   : > { %p23_p1 = scmp.eq.s32.totalorder %s22_s17, 0  ;;  %p33_p2 = scmp.eq.s32.totalorder %s600_s12, 0 }
   0x9   : > { %p38_p3 = scmp.ne.s32.totalorder %s592_s10, %s588_s9  ;;  %p39_p4 = scmp.eq.s32.totalorder %s643_s13, 0 }
   0xa   : > { %s659_s18 = scalar_select %p23_p1, %s596_s11, %s25_s16  }
   0xb   : > { %p661_p5 = por %p33_p2, %p32_p0  ;;  %p665_p6 = por %p39_p4, %p38_p3 }
   0xc   : > { %p83_p7 = scmp.eq.s32.totalorder %s643_s13, 1  ;;  %p89_p8 = scmp.eq.s32.totalorder %s422_s14, 1 }
   0xd   : > { %p454_p10 = scmp.lt.s32.totalorder %s600_s12, 2  ;;  %s112_s23 = sand.u32 1, %s596_s11  }
   0xe   : > { %p672_p11 = por %p83_p7, %p32_p0  ;;  %p676_p12 = por %p89_p8, %p38_p3 }
   0xf   : > { %s440_s24 = sshll.u32 %s600_s12, 6  ;;  %s425_s25 = sshll.u32 %s112_s23, 6 }
  0x10   : > { %s121_s28 = scalar_lea.hbm %s806_s0, %s440_s24  ;;  %s116_s30 = scalar_lea.vmem [#allocation2], %s425_s25 }
  0x11   : > { %s122_s29 = sshll.u32 %s121_s28, 4  ;;  %s124_s3 = sshll.u32 %s116_s30, 4  ;;  %s123_s29 = int_to_ptr.hbm [resolvable:$true] %s122_s29  ;;  %s125_s3 = int_to_ptr.vmem [resolvable:$true] %s124_s3 }
  0x12   : > { %p687_p13 = pnand %p454_p10, %p661_p5  ;;  %p428_p0 = scmp.ge.s32.totalorder %s600_s12, 1 }
  0x13   : > { %p132_p1 = scmp.lt.s32.totalorder %s600_s12, 3  ;;  %s113_s5 = scalar_lea.sflag [#allocation3], %s112_s23 }
  0x14   : > { %s504_s6 = sshra.s32 %s123_s29, 4  ;;  %p508_p3 = pneg %p687_p13  ;;  %s505_s6 = int_to_ptr.hbm [resolvable:$true] %s504_s6 }
  0x15   : > { %s506_s7 = scalar_lea.hbm %s505_s6, 64  ;;  %s511_s16 = scalar_lea.hbm %s806_s0, 128 }
  0x16   : > { %p507_p2 = scmp.ne.s32.totalorder %s505_s6, %s506_s7  ;;  %p512_p5 = scmp.lt.s32.totalorder %s505_s6, %s806_s0 }
  0x17   : > { %p513_p8 = scmp.lt.s32.totalorder %s511_s16, %s506_s7 }
  0x18   : > { %p509_p4 = pnand %p508_p3, %p507_p2 }
  0x19   : > { %p514_p10 = por %p513_p8, %p512_p5 }
  0x1a   : > { %p510_p7 = pneg %p509_p4 }
  0x1c   : > { %p515_p9 = pnand %p514_p10, %p510_p7 }
  0x1e   : > { %518 = shalt.err (!%p515_p9)
}
  0x1f   : > { %s602_s23 = smov 256   ;;  %s603_s24 = smov 16  }
  0x20   : > { %449 = dma.hbm_to_vmem [thread:$0]  (!%p687_p13), %s123_s29, 1024, %s125_s3, %s113_s5, %s602_s23, %s602_s23, %s603_s24  }
  0x21   : > { %p133_p2 = pnand %p428_p0, %p132_p1 }
  0x22   : > { %s708_s25 = sand.u32 (!%p133_p2), 1, %s592_s10  }
  0x23   : > { %136 = sbr.rel (%p133_p2) target bundleno = 587 (0x24b), region = 28  ;;  %s429_s26 = sshll.u32 (!%p133_p2), %s708_s25, 6 }
  0x24   : > { %s139_s27 = scalar_lea.sflag (!%p133_p2), [#allocation3], %s708_s25  ;;  %s142_s28 = scalar_lea.vmem (!%p133_p2), [#allocation2], %s429_s26 }
  0x28   : > { %579 = dma.done.wait (%p665_p6), %s139_s27, 1024  }
  0x29   : > { %581 = vsyncadd (%p665_p6), %s139_s27, 4294966272  ;;  %v718_v0 = vld [vmem:[%s142_s28] sm:$0xff]  ;;  %v720_v1 = vld [vmem:[%s142_s28 + $0x8] sm:$0xff]  ;;  %v604_v14 = vmov 256.0   ;;  %v206_v22 = vlaneseq  ;;  %vm211_vm1 = vcmask 130112   ;;  %vm215_vm2 = vcmask 195712  }
  0x2a   : > { %v722_v2 = vld [vmem:[%s142_s28 + $0x20] sm:$0xff]  ;;  %v172_v3 = vadd.f32 %v720_v1, %v718_v0  ;;  %v726_v4 = vld [vmem:[%s142_s28 + $0x28] sm:$0xff]  ;;  %v730_v6 = vld [vmem:[%s142_s28 + $0x10] sm:$0xff]  ;;  %498 = vrcp.f32 %v604_v14  ;;  %vm219_vm3 = vcmask 261312   ;;  %vm221_vm4 = vcmask 261120   ;;  %s163_s24 = scalar_lea.vmem [#allocation5], %s429_s26 }
  0x2b   : > { %v178_v5 = vadd.f32 %v726_v4, %v722_v2  ;;  %v732_v7 = vld [vmem:[%s142_s28 + $0x18] sm:$0xff]  ;;  %v734_v8 = vld [vmem:[%s142_s28 + $0x30] sm:$0xff]  ;;  %v196_v15 = vld [vmem:[%s807_s1 + $0x8] sm:$0xff]  ;;  %v207_v26 = vand.u32 127, %v206_v22  ;;  %vm249_vm5 = vcmask 1043456   ;;  %vm245_vm6 = vcmask 31744  }
  0x2c   : > { %173 = vadd.xlane.f32.xlu0 %v172_v3  ;;  %v736_v9 = vld [vmem:[%s142_s28 + $0x38] sm:$0xff]  ;;  %v175_v10 = vadd.f32 %v732_v7, %v730_v6  ;;  %v197_v13 = vld [vmem:[%s807_s1 + $0x10] sm:$0xff]  ;;  %v195_v16 = vld [vmem:[%s807_s1] sm:$0xff]  ;;  %v294_v48 = vshrl.u32 %v206_v22, 7  ;;  %s441_s27 = sshll.u32 %s643_s13, 6  ;;  %s346_s30 = sshll.u32 %s163_s24, 4  ;;  %s347_s30 = int_to_ptr.vmem [resolvable:$true] %s346_s30 }
  0x2d   : > { %179 = vadd.xlane.f32.xlu1 %v178_v5  ;;  %v181_v11 = vadd.f32 %v736_v9, %v734_v8  ;;  %v198_v12 = vld [vmem:[%s807_s1 + $0x18] sm:$0xff]  ;;  %v209_v28 = vadd.s32 4294967288, %v207_v26  ;;  %v213_v29 = vadd.s32 4294967280, %v207_v26  ;;  %v217_v32 = vadd.s32 4294967272, %v207_v26  ;;  %v200_v43 = vld [vmem:[%s807_s1 + $0x28] sm:$0xf]  ;;  %s345_s29 = scalar_lea.hbm %s808_s2, %s441_s27 }
  0x2e   : > { %236 = vmatpush.msra.mxu0 %v198_v12  ;;  %432 = vmatpush.msk.msra.mxu1 %vm249_vm5, %v200_v43  ;;  %v199_v44 = vld [vmem:[%s807_s1 + $0x20] sm:$0x1]  ;;  %v313_v49 = vadd.s32 24, %v294_v48  ;;  %v307_v50 = vadd.s32 16, %v294_v48  ;;  %v201_v51 = vld [vmem:[%s807_s1 + $0x30] sm:$0x1] }
  0x2f   : > { %493 = vset.pattern.permute.xlu2 %v294_v48  ;;  %v301_v12 = vadd.s32 8, %v294_v48  ;;  %s348_s3 = sshll.u32 %s345_s29, 4  ;;  %s334_s13 = scalar_lea.sflag [#allocation4], %s708_s25  ;;  %s349_s3 = int_to_ptr.hbm [resolvable:$true] %s348_s3 }
  0x30   : > { %237 = vmatpush.msra.mxu0 %v197_v13  ;;  %v499_v17 = vpop.eup %498  ;;  %496 = vset.pattern.permute.xlu1 %v313_v49  ;;  %s548_s26 = sshra.s32 %s349_s3, 4  ;;  %s554_s7 = scalar_lea.hbm %s808_s2, 128  ;;  %s549_s26 = int_to_ptr.hbm [resolvable:$true] %s548_s26 }
  0x31   : > { %v185_v18 = vmul.f32 256.0, %v499_v17  ;;  %vm189_vm0 = vweird.f32 %v499_v17  ;;  %495 = vset.pattern.permute.xlu0 %v307_v50  ;;  %s550_s4 = scalar_lea.hbm %s549_s26, 64  ;;  %p555_p0 = scmp.lt.s32.totalorder %s549_s26, %s808_s2 }
  0x32   : > { %238 = vmatpush.msra.mxu0 %v196_v15  ;;  %p551_p6 = scmp.ne.s32.totalorder %s549_s26, %s550_s4  ;;  %p556_p1 = scmp.lt.s32.totalorder %s554_s7, %s550_s4 }
  0x33   : > { %v186_v19 = vsub.f32 1.0, %v185_v18 }
  0x34   : > { %176 = vadd.xlane.f32.xlu0 %v175_v10  ;;  %239 = vmatpush.msra.mxu0 %v195_v16  ;;  %p552_p9 = pnand %p551_p6, %p672_p11  ;;  %p557_p3 = por %p556_p1, %p555_p0 }
  0x35   : > { %182 = vadd.xlane.f32.xlu1 %v181_v11  ;;  %v187_v20 = vmul.f32 %v499_v17, %v186_v19 }
  0x36   : > { %p553_p13 = pneg %p552_p9 }
  0x37   : > { %v188_v21 = vadd.f32 %v499_v17, %v187_v20 }
  0x38   : > { %p558_p4 = pnand %p557_p3, %p553_p13 }
  0x39   : > { %v190_v25 = vsel %vm189_vm0, %v499_v17, %v188_v21 }
  0x9f   : > { %v174_v23 = vpop.xlane.xlu0 %173 }
  0xa0   : > { %v180_v24 = vpop.xlane.xlu1 %179  ;;  %v191_v27 = vmul.f32 %v190_v25, %v174_v23 }
  0xa1   : > { %v193_v30 = vmul.f32 %v190_v25, %v180_v24 }
  0xa2   : > { %v208_v36 = vperm.slane %v191_v27, %v207_v26 }
  0xa3   : > { %v214_v38 = vperm.slane %v193_v30, %v213_v29 }
  0xa7   : > { %v177_v31 = vpop.xlane.xlu0 %176 }
  0xa8   : > { %v192_v33 = vmul.f32 %v190_v25, %v177_v31  ;;  %v183_v34 = vpop.xlane.xlu1 %182 }
  0xa9   : > { %v194_v35 = vmul.f32 %v190_v25, %v183_v34 }
  0xaa   : > { %v210_v37 = vperm.slane %v192_v33, %v209_v28 }
  0xab   : > { %v218_v39 = vperm.slane %v194_v35, %v217_v32 }
  0xac   : > { %v212_v40 = vsel %vm211_vm1, %v210_v37, %v208_v36 }
  0xad   : > { %v216_v41 = vsel %vm215_vm2, %v214_v38, %v212_v40 }
  0xae   : > { %v220_v42 = vsel %vm219_vm3, %v218_v39, %v216_v41 }
  0xaf   : > { %431 = vmatmul.msk.f32.vlgmr.msra.gmra.mxu0 %vm221_vm4, %v220_v42 }
 0x12c   : > { %v241_v45 = vpop.f32.mrf.mxu0 }
 0x12d   : > { %v242_v46 = vadd.f32 %v241_v45, %v199_v44 }
 0x12f   : > { %v244_v47 = vmax.f32 %v242_v46, 0.0 }
 0x131   : > { %433 = vmatmul.msk.f32.vlgmr.msra.gmra.mxu1 %vm245_vm6, %v244_v47 }
 0x1ae   : > { %v270_v52 = vpop.f32.mrf.mxu1 }
 0x1af   : > { %v271_v53 = vadd.f32 %v270_v52, %v201_v51 }
 0x1b1   : > { %v434_v54 = vmul.f32 -1.442695, %v271_v53 }
 0x1b3   : > { %500 = vpow2.f32 %v434_v54 }
 0x1b9   : > { %v501_v55 = vpop.eup %500 }
 0x1ba   : > { %v276_v56 = vadd.f32 1.0, %v501_v55 }
 0x1bc   : > { %502 = vrcp.f32 %v276_v56  ;;  %v288_v60 = vand.u32 2147483648, %v276_v56  ;;  %v286_v62 = vand.u32 2147483647, %v276_v56  ;;  %vm282_vm8 = vweird.f32 %v276_v56 }
 0x1be   : > { %v289_v3 = vor.u32 1.1754944e-38, %v288_v60  ;;  %vm287_vm10 = vcmp.eq.f32.partialorder %v286_v62, 8.507059e+37 }
 0x1c2   : > { %v503_v57 = vpop.eup %502 }
 0x1c3   : > { %v278_v58 = vmul.f32 %v503_v57, %v276_v56  ;;  %vm283_vm7 = vweird.f32 %v503_v57 }
 0x1c4   : > { %vm284_vm9 = vmor %vm282_vm8, %vm283_vm7 }
 0x1c5   : > { %v279_v59 = vsub.f32 1.0, %v278_v58 }
 0x1c7   : > { %v280_v61 = vmul.f32 %v503_v57, %v279_v59 }
 0x1c9   : > { %v281_v63 = vadd.f32 %v503_v57, %v280_v61 }
 0x1cb   : > { %v285_v5 = vsel %vm284_vm9, %v503_v57, %v281_v63 }
 0x1cc   : > { %v290_v10 = vsel %vm287_vm10, %v289_v3, %v285_v5 }
 0x1cd   : > { %v292_v11 = vperm.slane %v290_v10, 0 }
 0x1cf   : > { %315 = vperm.xlu1 %496, %v292_v11   ;;  %309 = vperm.xlu0 %495, %v292_v11  }
 0x1d0   : > { %297 = vperm.xlu2 %493, %v292_v11  }
 0x1d7   : > { %497 = vset.pattern.permute.xlu0 %v313_v49 }
 0x1d8   : > { %494 = vset.pattern.permute.xlu2 %v301_v12 }
 0x1e0   : > { %303 = vperm.xlu2 %494, %v292_v11  }
 0x22a   : > { %v298_v13 = vpop.permute.xlu2 %297 }
 0x22b   : > { %v317_v14 = vmul.f32 %v298_v13, %v718_v0  ;;  %v318_v15 = vmul.f32 %v298_v13, %v720_v1 }
 0x22d   : > { %325 = vst [vmem:[%s163_s24] sm:$0xff] %v317_v14 }
 0x22e   : > { %326 = vst [vmem:[%s163_s24 + $0x8] sm:$0xff] %v318_v15 }
 0x23a   : > { %v304_v16 = vpop.permute.xlu2 %303 }
 0x23b   : > { %v319_v17 = vmul.f32 %v304_v16, %v730_v6  ;;  %v320_v18 = vmul.f32 %v304_v16, %v732_v7 }
 0x23d   : > { %327 = vst [vmem:[%s163_s24 + $0x10] sm:$0xff] %v319_v17 }
 0x23e   : > { %328 = vst [vmem:[%s163_s24 + $0x18] sm:$0xff] %v320_v18 }
 0x241   : > { %v316_v0 = vpop.permute.xlu1 %315  ;;  %v310_v1 = vpop.permute.xlu0 %309 }
 0x242   : > { %v323_v19 = vmul.f32 %v316_v0, %v734_v8  ;;  %v324_v20 = vmul.f32 %v316_v0, %v736_v9  ;;  %v321_v6 = vmul.f32 %v310_v1, %v722_v2  ;;  %v322_v7 = vmul.f32 %v310_v1, %v726_v4 }
 0x244   : > { %331 = vst [vmem:[%s163_s24 + $0x30] sm:$0xff] %v323_v19 }
 0x245   : > { %332 = vst [vmem:[%s163_s24 + $0x38] sm:$0xff] %v324_v20 }
 0x246   : > { %329 = vst [vmem:[%s163_s24 + $0x20] sm:$0xff] %v321_v6 }
 0x247   : > { %330 = vst [vmem:[%s163_s24 + $0x28] sm:$0xff] %v322_v7 }
 0x248   : > { %561 = shalt.err (!%p558_p4)
}
 0x249   : > { %s605_s25 = smov 256   ;;  %s606_s16 = smov 16  }
 0x24a   : > { %444 = dma.vmem_to_hbm [thread:$0]  (%p672_p11), %s347_s30, 1024, %s349_s3, %s334_s13, %s605_s25, %s605_s25, %s606_s16  }
 0x24b PF: > { %s363_s17 = sand.u32 1, %s588_s9   ;;  %p814_p7 = scmp.ge.s32.totalorder %s600_s12, 2 }
 0x24c   : > { %s364_s19 = scalar_lea.sflag [#allocation4], %s363_s17 }
 0x24d   : > { %p451_p5 = pnand %p814_p7, %p676_p12 }
 0x24f   : > { %p452_p8 = pneg %p451_p5 }
 0x251   : > { %583 = dma.done.wait (%p452_p8), %s364_s19, 1024  }
 0x252   : > { %585 = vsyncadd (%p452_p8), %s364_s19, 4294966272  ;;  %p15_p10 = scmp.ge.s32.totalorder %s647_s15, 4   ;;  %s815_s9 = smov %s592_s10 }
 0x253   : > { %s816_s10 = smov %s596_s11  ;;  %s817_s11 = smov %s659_s18 }
 0x254   : > { %s818_s12 = smov %s647_s15  ;;  %17 = sbr.rel (!%p15_p10) target bundleno = 5 (0x5), region = 73 }
 0x259   :  { %370 = vsyncpa [#allocation3], 1 }
 0x25a   :  { %372 = vsyncpa [#allocation3 + $0x1], 1 }
 0x25b   :  { %373 = vsyncpa [#allocation4], 1 }
 0x25c   :  { %375 = vsyncpa [#allocation4 + $0x1], 1 }

</bundles_post_ra>
